<compile_context>
chip_gen: v6e
topology: v6e:2x2x1
jax: 0.10.0
libtpu: 0.0.40
codegen_flags: <defaults>
</compile_context>

<pallas_src>
import functools

import jax
import jax.numpy as jnp
from jax.experimental import pallas as pl
from jax.experimental.pallas import tpu as pltpu

NEG_SLOPE = 0.01  # F.leaky_relu default


def _leaky(v):
    return jnp.where(v >= 0, v, NEG_SLOPE * v)


def _round8(n):
    return (n + 7) // 8 * 8


def _round_lanes(n):
    return (n + 127) // 128 * 128


def _w1_offsets(gin, xf_dim):
    """8-aligned row offsets inside the folded layer-1 slab (width = 2*h1)."""
    w1g = 0
    w1x = _round8(gin)
    b1 = w1x + _round8(xf_dim)
    rows = _round8(b1 + 1)
    return dict(w1g=w1g, w1x=w1x, b1=b1, rows=rows)


def _choose_tb(B, tb_max=1024):
    """Batch tile: big (amortize per-step overhead) but >= 2 grid steps when B allows (v7x)."""
    if B <= 16:
        return B                      # single tile; block sublane dim == full array dim
    return min(_round8(-(-B // 2)), tb_max)


def a2c_kernel(gxw_ref, xf_ref, w1_ref, w2_ref, w3_ref, o_ref,
               *, gin, xf_dim, h1, h2, offs):
    f32 = jnp.float32
    cdt = w1_ref.dtype                              # MXU operand dtype (f32 or bf16)

    # --- GCN + node-mean, algebraically collapsed (colmean(A_hat) pre-multiplied into X) ---
    #   mean_rows(A_hat (X Wg) + bg) == ((colmean(A_hat) @ X) @ Wg) + bg   (exact)
    gm = jnp.sum(gxw_ref[...].astype(f32), axis=1)  # (TB, gin)   sublane reduce only

    # --- folded fused first layer: Wg/bg pre-multiplied into W1 (actor|critic fused) ---
    w1g = w1_ref[offs['w1g']:offs['w1g'] + gin, :]
    w1x = w1_ref[offs['w1x']:offs['w1x'] + xf_dim, :]
    b1 = w1_ref[offs['b1']:offs['b1'] + 1, :].astype(f32)
    y1 = (jnp.dot(gm.astype(cdt), w1g, preferred_element_type=f32)
          + jnp.dot(xf_ref[...].astype(cdt), w1x, preferred_element_type=f32)
          + b1)
    y1 = _leaky(y1)                                 # (TB, 2*h1)  elementwise in f32 (v5e)

    # --- block-diagonal second layer: one (TB,2*h1)@(2*h1,2*h2) matmul, no slices/concat ---
    w2 = w2_ref[0:2 * h1, :]
    b2 = w2_ref[2 * h1:2 * h1 + 1, :].astype(f32)
    y2 = _leaky(jnp.dot(y1.astype(cdt), w2, preferred_element_type=f32) + b2)  # (TB, 2*h2)

    # --- block-diagonal fused output layer, 128-lane padded -> unmasked lane-dense store ---
    w3 = w3_ref[0:2 * h2, :]
    b3 = w3_ref[2 * h2:2 * h2 + 1, :].astype(f32)
    o_ref[...] = (jnp.dot(y2.astype(cdt), w3, preferred_element_type=f32) + b3
                  ).astype(o_ref.dtype)             # (TB, out_pad)


def a2c_forward(adj_norm, gcn_x, x_feat, packed, *, out_dim, tb_max=1024):
    """adj_norm: [B,N,N], gcn_x: [B,N,Gin], x_feat: [B,Xf] -> (actor [B,out], critic [B,1])."""
    B, N, gin = gcn_x.shape
    xf_dim = x_feat.shape[-1]
    h1 = packed["w1slab"].shape[-1] // 2
    h2 = packed["w2slab"].shape[-1] // 2
    out_pad = packed["w3slab"].shape[-1]
    cdt = packed["w1slab"].dtype
    offs = _w1_offsets(gin, xf_dim)

    # mean over axis=1 (the *output-node* axis) of the normalized adjacency.  This is the
    # exact quantity that collapses mean_rows(A_hat @ X @ Wg); it equals the row mean only
    # when A_hat is symmetric (build_normalized_adj does NOT symmetrize directed edges), so
    # do not "fix" this to axis=2.
    colmean = jnp.mean(adj_norm, axis=1)                         # (B, N)
    gxw = (gcn_x * colmean[:, :, None]).astype(cdt)              # (B, N, Gin) lane-dense
    xf = x_feat.astype(cdt)

    TB = _choose_tb(B, tb_max)
    grid = (pl.cdiv(B, TB),)

    kern = functools.partial(a2c_kernel, gin=gin, xf_dim=xf_dim, h1=h1, h2=h2, offs=offs)

    out = pl.pallas_call(
        kern,
        out_shape=jax.ShapeDtypeStruct((B, out_pad), jnp.float32),
        grid_spec=pltpu.PrefetchScalarGridSpec(
            num_scalar_prefetch=0,
            grid=grid,
            in_specs=[
                pl.BlockSpec((TB, N, gin), lambda i: (i, 0, 0)),      # colmean-scaled node feats
                pl.BlockSpec((TB, xf_dim), lambda i: (i, 0)),         # flat per-sample features
                pl.BlockSpec(packed["w1slab"].shape, lambda i: (0, 0)),
                pl.BlockSpec(packed["w2slab"].shape, lambda i: (0, 0)),
                pl.BlockSpec(packed["w3slab"].shape, lambda i: (0, 0)),
            ],
            out_specs=pl.BlockSpec((TB, out_pad), lambda i: (i, 0)),
        ),
        compiler_params=pltpu.CompilerParams(
            dimension_semantics=("parallel",),
        ),
    )(gxw, xf, packed["w1slab"], packed["w2slab"], packed["w3slab"])

    return out[:, :out_dim], out[:, out_dim:out_dim + 1]


def pack_params(params, dtype=jnp.float32):
    """Fold GCN into layer 1, block-diagonalize layers 2/3, pack into 3 slabs."""
    gin = params["wg"].shape[0]
    in_dim, h1 = params["wa1"].shape
    h2 = params["wa2"].shape[1]
    out_dim = params["wa3"].shape[1]
    xf_dim = in_dim - gin
    assert 2 * h1 == h2, "module invariant: fcn2_outdim == 2 * fcn1_outdim"

    w1 = jnp.concatenate([params["wa1"], params["wc1"]], axis=1)       # (in_dim, 2*h1)
    b1 = jnp.concatenate([params["ba1"], params["bc1"]], axis=1)       # (1, 2*h1)
    w1_g, w1_x = w1[:gin, :], w1[gin:, :]
    # Fold GCN weight/bias (exact, done once offline in f32):
    #   g @ W1_g = (gm @ wg + bg) @ W1_g = gm @ (wg @ W1_g) + (bg @ W1_g)
    w1g_folded = params["wg"] @ w1_g                                   # (gin, 2*h1)
    b1_folded = params["bg"].reshape(1, gin) @ w1_g + b1               # (1, 2*h1)

    offs = _w1_offsets(gin, xf_dim)
    w1slab = jnp.zeros((offs["rows"], 2 * h1), jnp.float32)
    w1slab = w1slab.at[offs["w1g"]:offs["w1g"] + gin, :].set(w1g_folded)
    w1slab = w1slab.at[offs["w1x"]:offs["w1x"] + xf_dim, :].set(w1_x)
    w1slab = w1slab.at[offs["b1"]:offs["b1"] + 1, :].set(b1_folded)

    # Block-diagonal second layer: [wa2 0; 0 wc2] with bias row [ba2 | bc2].
    w2slab = jnp.zeros((_round8(2 * h1 + 1), 2 * h2), jnp.float32)
    w2slab = w2slab.at[:h1, :h2].set(params["wa2"])
    w2slab = w2slab.at[h1:2 * h1, h2:].set(params["wc2"])
    w2slab = w2slab.at[2 * h1:2 * h1 + 1, :].set(
        jnp.concatenate([params["ba2"], params["bc2"]], axis=1))

    # Block-diagonal fused output layer, lane-padded to a multiple of 128.
    out_pad = _round_lanes(out_dim + 1)
    w3slab = jnp.zeros((_round8(2 * h2 + 1), out_pad), jnp.float32)
    w3slab = w3slab.at[:h2, :out_dim].set(params["wa3"])
    w3slab = w3slab.at[h2:2 * h2, out_dim:out_dim + 1].set(params["wc3"])
    w3slab = w3slab.at[2 * h2:2 * h2 + 1, :out_dim + 1].set(
        jnp.concatenate([params["ba3"], params["bc3"]], axis=1))

    return {"w1slab": w1slab.astype(dtype),
            "w2slab": w2slab.astype(dtype),
            "w3slab": w3slab.astype(dtype)}


def build_normalized_adj(edge_index, num_nodes):
    """PyG GCNConv default normalization: add self loops, D^-1/2 (A+I) D^-1/2.

    edge_index: [2, E] int32 (row=src, col=dst). Dense scatter-add built in plain JAX.
    """
    # TODO(synk): sparse edge_index scatter-add has no clean Pallas equivalent at these sizes;
    # adjacency normalization stays in the JAX wrapper.
    src = jnp.concatenate([edge_index[0], jnp.arange(num_nodes, dtype=edge_index.dtype)])
    dst = jnp.concatenate([edge_index[1], jnp.arange(num_nodes, dtype=edge_index.dtype)])
    A = jnp.zeros((num_nodes, num_nodes), jnp.float32).at[dst, src].add(1.0)
    deg = jnp.sum(A, axis=1)
    d = jnp.where(deg > 0, jax.lax.rsqrt(deg), 0.0)
    return d[:, None] * A * d[None, :]


def init_params(key, gcn_indim, in_dim, out_dim):
    h1, h2 = in_dim * 4, in_dim * 8
    ks = jax.random.split(key, 14)

    def w(k, i, o):
        return jax.random.normal(k, (i, o), jnp.float32) * 0.1

    def b(k, o):
        return jax.random.normal(k, (1, o), jnp.float32) * 0.1

    return {
        "wg": w(ks[0], gcn_indim, gcn_indim), "bg": b(ks[1], gcn_indim),
        "wa1": w(ks[2], in_dim, h1), "ba1": b(ks[3], h1),
        "wa2": w(ks[4], h1, h2), "ba2": b(ks[5], h2),
        "wa3": w(ks[6], h2, out_dim), "ba3": b(ks[7], out_dim),
        "wc1": w(ks[8], in_dim, h1), "bc1": b(ks[9], h1),
        "wc2": w(ks[10], h1, h2), "bc2": b(ks[11], h2),
        "wc3": w(ks[12], h2, 1), "bc3": b(ks[13], 1),
    }


def reference_forward(adj_norm, gcn_x, x_feat, params):
    """Pure-JAX reference mirroring the PyTorch batched forward (unfused, full GCN)."""
    h = jnp.einsum("bij,bjf->bif", adj_norm, gcn_x @ params["wg"]) + params["bg"]
    g = jnp.mean(h, axis=1)                       # [B, Gin]
    y = jnp.concatenate([g, x_feat], axis=1)      # [B, in_dim]
    a = _leaky(y @ params["wa1"] + params["ba1"])
    a = _leaky(a @ params["wa2"] + params["ba2"])
    a = a @ params["wa3"] + params["ba3"]
    c = _leaky(y @ params["wc1"] + params["bc1"])
    c = _leaky(c @ params["wc2"] + params["bc2"])
    c = c @ params["wc3"] + params["bc3"]
    return a, c


if __name__ == "__main__":
    GCN_INDIM = 8
    IN_DIM = 16          # fcn1 input dim = gcn_indim + per-sample flat feature dim
    OUT_DIM = 4
    XF_DIM = IN_DIM - GCN_INDIM
    N, E = 8, 12

    key = jax.random.PRNGKey(0)
    k_p, k_x, k_gx, k_e = jax.random.split(key, 4)
    params = init_params(k_p, GCN_INDIM, IN_DIM, OUT_DIM)

    fwd = jax.jit(a2c_forward, static_argnames=("out_dim", "tb_max"))

    # --- f32 path: tiny batch, single grid step, tight tolerance (exact semantics) ---
    B1 = 2
    x1 = jax.random.normal(k_x, (B1, XF_DIM), jnp.float32)
    gx1 = jax.random.normal(k_gx, (B1, N, GCN_INDIM), jnp.float32)
    ei1 = jax.random.randint(k_e, (B1, 2, E), 0, N, dtype=jnp.int32)
    adj1 = jnp.stack([build_normalized_adj(ei1[i], N) for i in range(B1)])

    packed_f32 = pack_params(params, dtype=jnp.float32)
    a, c = fwd(adj1, gx1, x1, packed_f32, out_dim=OUT_DIM)
    jax.block_until_ready((a, c))
    a_ref, c_ref = reference_forward(adj1, gx1, x1, params)
    assert a.shape == (B1, OUT_DIM) and c.shape == (B1, 1)
    assert jnp.allclose(a, a_ref, atol=1e-4, rtol=1e-4)
    assert jnp.allclose(c, c_ref, atol=1e-4, rtol=1e-4)

    # --- bf16 path (v6e/v7x DMA/MXU win): multi-step grid with uneven last tile ---
    B2 = 24
    k_x2, k_gx2, k_e2 = jax.random.split(jax.random.PRNGKey(1), 3)
    x2 = jax.random.normal(k_x2, (B2, XF_DIM), jnp.float32)
    gx2 = jax.random.normal(k_gx2, (B2, N, GCN_INDIM), jnp.float32)
    ei2 = jax.random.randint(k_e2, (B2, 2, E), 0, N, dtype=jnp.int32)
    adj2 = jnp.stack([build_normalized_adj(ei2[i], N) for i in range(B2)])

    packed_bf16 = pack_params(params, dtype=jnp.bfloat16)
    a2, c2 = fwd(adj2, gx2, x2, packed_bf16, out_dim=OUT_DIM)
    jax.block_until_ready((a2, c2))
    a2_ref, c2_ref = reference_forward(adj2, gx2, x2, params)
    assert a2.shape == (B2, OUT_DIM) and c2.shape == (B2, 1)
    # bf16 operands (f32 accumulation) -> loose tolerance vs the f32 reference.
    assert jnp.allclose(a2, a2_ref, atol=1e-1, rtol=1e-1)
    assert jnp.allclose(c2, c2_ref, atol=1e-1, rtol=1e-1)

    print("KERNEL_OK")
</pallas_src>

<mosaic_0001>
module attributes {stable_mosaic.version = 11 : i64} {
  func.func @a2c_kernel(%arg0: i32, %arg1: memref<2x8x8xf32, #tpu.memory_space<vmem>>, %arg2: memref<2x8xf32, #tpu.memory_space<vmem>>, %arg3: memref<24x128xf32, #tpu.memory_space<vmem>>, %arg4: memref<136x256xf32, #tpu.memory_space<vmem>>, %arg5: memref<264x128xf32, #tpu.memory_space<vmem>>, %arg6: memref<2x128xf32, #tpu.memory_space<vmem>>) attributes {dimension_semantics = [#tpu.dimension_semantics<parallel>], iteration_bounds = array<i64: 1>, scalar_prefetch = 0 : i64, scratch_operands = 0 : i64, tpu.core_type = #tpu.core_type<tc>, window_params = [{transform_indices = @transform_0, window_bounds = array<i64: 2, 8, 8>}, {transform_indices = @transform_1, window_bounds = array<i64: 2, 8>}, {pipeline_mode = #tpu.pipeline_mode<synchronous>, transform_indices = @transform_2, window_bounds = array<i64: 24, 128>}, {pipeline_mode = #tpu.pipeline_mode<synchronous>, transform_indices = @transform_3, window_bounds = array<i64: 136, 256>}, {pipeline_mode = #tpu.pipeline_mode<synchronous>, transform_indices = @transform_4, window_bounds = array<i64: 264, 128>}, {transform_indices = @transform_5, window_bounds = array<i64: 2, 128>}]} {
    %c0 = arith.constant 0 : index
    %c0_0 = arith.constant 0 : index
    %c0_1 = arith.constant 0 : index
    %0 = vector.load %arg1[%c0, %c0_0, %c0_1] : memref<2x8x8xf32, #tpu.memory_space<vmem>>, vector<2x8x8xf32>
    %cst = arith.constant dense<0.000000e+00> : vector<2x8xf32>
    %1 = vector.multi_reduction <add>, %0, %cst [1] : vector<2x8x8xf32> to vector<2x8xf32>
    %c0_2 = arith.constant 0 : index
    %c0_3 = arith.constant 0 : index
    %2 = vector.load %arg3[%c0_2, %c0_3] : memref<24x128xf32, #tpu.memory_space<vmem>>, vector<8x128xf32>
    %c8 = arith.constant 8 : index
    %c0_4 = arith.constant 0 : index
    %3 = vector.load %arg3[%c8, %c0_4] : memref<24x128xf32, #tpu.memory_space<vmem>>, vector<8x128xf32>
    %c16 = arith.constant 16 : index
    %c0_5 = arith.constant 0 : index
    %4 = vector.load %arg3[%c16, %c0_5] : memref<24x128xf32, #tpu.memory_space<vmem>>, vector<1x128xf32>
    %cst_6 = arith.constant dense<0.000000e+00> : vector<2x128xf32>
    %5 = tpu.matmul %1, %2, %cst_6 {dimension_numbers = #tpu.dot_dimension_numbers<[1], [0], [0], [1], [0, 0, 1, 1], [], []>} : vector<2x8xf32>, vector<8x128xf32>, vector<2x128xf32> -> vector<2x128xf32>
    %c0_7 = arith.constant 0 : index
    %c0_8 = arith.constant 0 : index
    %6 = vector.load %arg2[%c0_7, %c0_8] : memref<2x8xf32, #tpu.memory_space<vmem>>, vector<2x8xf32>
    %cst_9 = arith.constant dense<0.000000e+00> : vector<2x128xf32>
    %7 = tpu.matmul %6, %3, %cst_9 {dimension_numbers = #tpu.dot_dimension_numbers<[1], [0], [0], [1], [0, 0, 1, 1], [], []>} : vector<2x8xf32>, vector<8x128xf32>, vector<2x128xf32> -> vector<2x128xf32>
    %8 = arith.addf %5, %7 : vector<2x128xf32>
    %9 = vector.broadcast %4 : vector<1x128xf32> to vector<2x128xf32>
    %10 = arith.addf %8, %9 : vector<2x128xf32>
    %cst_10 = arith.constant 0.000000e+00 : f32
    %11 = vector.broadcast %cst_10 : f32 to vector<2x128xf32>
    %12 = arith.cmpf oge, %10, %11 : vector<2x128xf32>
    %cst_11 = arith.constant 0.00999999977 : f32
    %13 = vector.broadcast %cst_11 : f32 to vector<2x128xf32>
    %14 = arith.mulf %13, %10 : vector<2x128xf32>
    %15 = arith.select %12, %10, %14 : vector<2x128xi1>, vector<2x128xf32>
    %c0_12 = arith.constant 0 : index
    %c0_13 = arith.constant 0 : index
    %16 = vector.load %arg4[%c0_12, %c0_13] : memref<136x256xf32, #tpu.memory_space<vmem>>, vector<128x256xf32>
    %c128 = arith.constant 128 : index
    %c0_14 = arith.constant 0 : index
    %17 = vector.load %arg4[%c128, %c0_14] : memref<136x256xf32, #tpu.memory_space<vmem>>, vector<1x256xf32>
    %cst_15 = arith.constant dense<0.000000e+00> : vector<2x256xf32>
    %18 = tpu.matmul %15, %16, %cst_15 {dimension_numbers = #tpu.dot_dimension_numbers<[1], [0], [0], [1], [0, 0, 1, 1], [], []>} : vector<2x128xf32>, vector<128x256xf32>, vector<2x256xf32> -> vector<2x256xf32>
    %19 = vector.broadcast %17 : vector<1x256xf32> to vector<2x256xf32>
    %20 = arith.addf %18, %19 : vector<2x256xf32>
    %cst_16 = arith.constant 0.000000e+00 : f32
    %21 = vector.broadcast %cst_16 : f32 to vector<2x256xf32>
    %22 = arith.cmpf oge, %20, %21 : vector<2x256xf32>
    %cst_17 = arith.constant 0.00999999977 : f32
    %23 = vector.broadcast %cst_17 : f32 to vector<2x256xf32>
    %24 = arith.mulf %23, %20 : vector<2x256xf32>
    %25 = arith.select %22, %20, %24 : vector<2x256xi1>, vector<2x256xf32>
    %c0_18 = arith.constant 0 : index
    %c0_19 = arith.constant 0 : index
    %26 = vector.load %arg5[%c0_18, %c0_19] : memref<264x128xf32, #tpu.memory_space<vmem>>, vector<256x128xf32>
    %c256 = arith.constant 256 : index
    %c0_20 = arith.constant 0 : index
    %27 = vector.load %arg5[%c256, %c0_20] : memref<264x128xf32, #tpu.memory_space<vmem>>, vector<1x128xf32>
    %cst_21 = arith.constant dense<0.000000e+00> : vector<2x128xf32>
    %28 = tpu.matmul %25, %26, %cst_21 {dimension_numbers = #tpu.dot_dimension_numbers<[1], [0], [0], [1], [0, 0, 1, 1], [], []>} : vector<2x256xf32>, vector<256x128xf32>, vector<2x128xf32> -> vector<2x128xf32>
    %29 = vector.broadcast %27 : vector<1x128xf32> to vector<2x128xf32>
    %30 = arith.addf %28, %29 : vector<2x128xf32>
    %c0_22 = arith.constant 0 : index
    %c0_23 = arith.constant 0 : index
    %31 = vector.load %arg6[%c0_22, %c0_23] : memref<2x128xf32, #tpu.memory_space<vmem>>, vector<2x128xf32>
    tpu.vector_store %arg6[%c0_22, %c0_23], %30 {strides = array<i32>} : memref<2x128xf32, #tpu.memory_space<vmem>>, vector<2x128xf32>,
    return
  }
  func.func @transform_0(%arg0: i32) -> (i32, i32, i32) {
    %c0_i32 = arith.constant 0 : i32
    %c0_i32_0 = arith.constant 0 : i32
    %c0_i32_1 = arith.constant 0 : i32
    return %arg0, %c0_i32, %c0_i32_0 : i32, i32, i32
  }
  func.func @transform_1(%arg0: i32) -> (i32, i32) {
    %c0_i32 = arith.constant 0 : i32
    %c0_i32_0 = arith.constant 0 : i32
    return %arg0, %c0_i32 : i32, i32
  }
  func.func @transform_2(%arg0: i32) -> (i32, i32) {
    %c0_i32 = arith.constant 0 : i32
    %c0_i32_0 = arith.constant 0 : i32
    %c0_i32_1 = arith.constant 0 : i32
    return %c0_i32, %c0_i32_0 : i32, i32
  }
  func.func @transform_3(%arg0: i32) -> (i32, i32) {
    %c0_i32 = arith.constant 0 : i32
    %c0_i32_0 = arith.constant 0 : i32
    %c0_i32_1 = arith.constant 0 : i32
    return %c0_i32, %c0_i32_0 : i32, i32
  }
  func.func @transform_4(%arg0: i32) -> (i32, i32) {
    %c0_i32 = arith.constant 0 : i32
    %c0_i32_0 = arith.constant 0 : i32
    %c0_i32_1 = arith.constant 0 : i32
    return %c0_i32, %c0_i32_0 : i32, i32
  }
  func.func @transform_5(%arg0: i32) -> (i32, i32) {
    %c0_i32 = arith.constant 0 : i32
    %c0_i32_0 = arith.constant 0 : i32
    return %arg0, %c0_i32 : i32, i32
  }
}

</mosaic_0001>

<bundles_post_ra>
// kernel: a2c_forward.1
= control target key start
LH: loop header
LB: loop body
LE: loop exit
PB: predicated region body
PF: predicated region fallthrough
CT: control target
= control target key end

     0   :  { %10 = vsyncpa [#allocation3], 0  ;;  %s636_s0 = inlined_call_operand.vmem [shape: f32[2,8,8], index: 0, kind: input, shape index: {}]   ;;  %s637_s1 = inlined_call_operand.vmem [shape: f32[2,8], index: 1, kind: input, shape index: {}]   ;;  %s638_s2 = inlined_call_operand.vmem [shape: f32[24,128], index: 2, kind: input, shape index: {}]   ;;  %s639_s3 = inlined_call_operand.hbm [shape: f32[136,256], index: 3, kind: input, shape index: {}]   ;;  %s640_s4 = inlined_call_operand.hbm [shape: f32[264,128], index: 4, kind: input, shape index: {}]   ;;  %s641_s5 = inlined_call_operand.vmem [shape: f32[2,128], index: 5, kind: output, shape index: {}]  }
   0x1   :  { %11 = vsyncpa [#allocation5], 0  ;;  %s567_s18 = smov [#allocation2]  }
   0x2   :  { %s23_s19 = sshll.u32 %s567_s18, 4  ;;  %s24_s19 = int_to_ptr.vmem [resolvable:$true] %s23_s19 }
   0x3   :  { %s531_s20 = scalar_lea.vmem %s24_s19, 4352  ;;  %p536_p1 = scmp.lt.s32.totalorder %s24_s19, %s24_s19 }
   0x4   :  { %p532_p0 = scmp.ne.s32.totalorder %s24_s19, %s531_s20  ;;  %p537_p2 = scmp.lt.s32.totalorder %s531_s20, %s531_s20 }
   0x6   :  { %p538_p3 = por %p537_p2, %p536_p1 }
   0x8   :  { %p539_p4 = pnand %p538_p3, %p532_p0 }
   0xa   :  { %542 = shalt.err (!%p539_p4)
}
   0xb   :  { %s568_s21 = smov 256   ;;  %s569_s22 = smov 16  }
   0xc   :  { %29 = dma.hbm_to_vmem [thread:$0]  %s639_s3, 4352, %s24_s19, [#allocation3], %s568_s21, %s568_s21, %s569_s22  }
   0xd   :  { %s570_s25 = smov [#allocation4]  }
   0xe   :  { %s35_s26 = sshll.u32 %s570_s25, 4  ;;  %s36_s26 = int_to_ptr.vmem [resolvable:$true] %s35_s26 }
   0xf   :  { %s551_s27 = scalar_lea.vmem %s36_s26, 4224  ;;  %p556_p6 = scmp.lt.s32.totalorder %s36_s26, %s36_s26 }
  0x10   :  { %p552_p5 = scmp.ne.s32.totalorder %s36_s26, %s551_s27  ;;  %p557_p7 = scmp.lt.s32.totalorder %s551_s27, %s551_s27 }
  0x12   :  { %p558_p8 = por %p557_p7, %p556_p6 }
  0x14   :  { %p559_p9 = pnand %p558_p8, %p552_p5 }
  0x16   :  { %562 = shalt.err (!%p559_p9)
}
  0x17   :  { %s571_s28 = smov 128   ;;  %s572_s29 = smov 8  }
  0x18   :  { %41 = dma.hbm_to_vmem [thread:$0]  %s640_s4, 4224, %s36_s26, [#allocation5], %s571_s28, %s571_s28, %s572_s29  }
  0x19   :  { %563 = dma.done.wait [#allocation3], 4352  }
  0x1a   :  { %564 = vsyncadd [#allocation3], 4294962944 }
  0x1b   :  { %565 = dma.done.wait [#allocation5], 4224  }
  0x1c   :  { %566 = vsyncadd [#allocation5], 4294963072  ;;  %v573_v0 = vmov 0.0   ;;  %vm574_vm0 = vmmov 0   ;;  %vm50_vm1 = vcmask 64512   ;;  %v66_v1 = vld [vmem:[%s638_s2 + $0x8] sm:$0xff] }
  0x1d   :  { %505 = vmatprep.subr.mxu0 %v573_v0  ;;  %507 = vmatprep.mubr.msk.f32.mxu0 %vm574_vm0, %v573_v0  ;;  %v48_v2 = vld [vmem:[%s636_s0] sm:$0xff]  ;;  %v49_v3 = vld [vmem:[%s636_s0 + $0x8] sm:$0xff]  ;;  %v257_v8 = vld [vmem:[#allocation2 + $0xf8] sm:$0xff]  ;;  %vm144_vm2 = vcmask 1041409  }
  0x1e   :  { %510 = vmatprep.subr.mxu1 %v573_v0  ;;  %512 = vmatprep.mubr.msk.f32.mxu1 %vm574_vm0, %v573_v0  ;;  %v51_v4 = vsel %vm50_vm1, %v48_v2, 0.0  ;;  %v58_v5 = vsel %vm50_vm1, %v49_v3, 0.0  ;;  %v68_v6 = vld [vmem:[%s637_s1] sm:$0x3]  ;;  %v256_v11 = vld [vmem:[#allocation2 + $0xf0] sm:$0xff]  ;;  %v255_v12 = vld [vmem:[#allocation2 + $0xe8] sm:$0xff] }
  0x1f   :  { %506 = vmatpush3.msra.mxu0 %v66_v1  ;;  %v65_v7 = vld [vmem:[%s638_s2] sm:$0xff]  ;;  %v52_v9 = vrot.slane %v51_v4, 4  ;;  %v59_v10 = vrot.slane %v58_v5, 4  ;;  %v253_v16 = vld [vmem:[#allocation2 + $0xd8] sm:$0xff]  ;;  %v252_v17 = vld [vmem:[#allocation2 + $0xd0] sm:$0xff] }
  0x20   :  { %508 = vmatmul.mubr.msk.f32.vlgmr.msra.gmra.mxu0 %vm50_vm1, %v68_v6  ;;  %511 = vmatpush3.msra.mxu1 %v65_v7  ;;  %v254_v13 = vld [vmem:[#allocation2 + $0xe0] sm:$0xff]  ;;  %v251_v20 = vld [vmem:[#allocation2 + $0xc8] sm:$0xff]  ;;  %v249_v24 = vld [vmem:[#allocation2 + $0xb8] sm:$0xff] }
  0x21   :  { %271 = vmatprep.subr.mxu0 %v257_v8  ;;  %335 = vmatprep.mubr.f32.mxu0 %v573_v0  ;;  %v53_v14 = vadd.f32 %v52_v9, %v51_v4  ;;  %v60_v15 = vadd.f32 %v59_v10, %v58_v5  ;;  %v250_v21 = vld [vmem:[#allocation2 + $0xc0] sm:$0xff]  ;;  %v248_v25 = vld [vmem:[#allocation2 + $0xb0] sm:$0xff]  ;;  %v247_v28 = vld [vmem:[#allocation2 + $0xa8] sm:$0xff] }
  0x22   :  { %272 = vmatpush1.msra.mxu0 %v256_v11  ;;  %v246_v29 = vld [vmem:[#allocation2 + $0xa0] sm:$0xff]  ;;  %v245_v32 = vld [vmem:[#allocation2 + $0x98] sm:$0xff]  ;;  %v244_v33 = vld [vmem:[#allocation2 + $0x90] sm:$0xff] }
  0x23   :  { %273 = vmatprep.subr.mxu0 %v255_v12  ;;  %v54_v18 = vrot.slane %v53_v14, 2  ;;  %v61_v19 = vrot.slane %v60_v15, 2  ;;  %v243_v35 = vld [vmem:[#allocation2 + $0x88] sm:$0xff]  ;;  %v242_v36 = vld [vmem:[#allocation2 + $0x80] sm:$0xff]  ;;  %v241_v37 = vld [vmem:[#allocation2 + $0x78] sm:$0xff] }
  0x24   :  { %274 = vmatpush1.msra.mxu0 %v254_v13  ;;  %v240_v38 = vld [vmem:[#allocation2 + $0x70] sm:$0xff]  ;;  %v239_v39 = vld [vmem:[#allocation2 + $0x68] sm:$0xff]  ;;  %v238_v40 = vld [vmem:[#allocation2 + $0x60] sm:$0xff] }
  0x25   :  { %275 = vmatprep.subr.mxu0 %v253_v16  ;;  %v55_v22 = vadd.f32 %v54_v18, %v53_v14  ;;  %v62_v23 = vadd.f32 %v61_v19, %v60_v15  ;;  %v237_v41 = vld [vmem:[#allocation2 + $0x58] sm:$0xff]  ;;  %v236_v42 = vld [vmem:[#allocation2 + $0x50] sm:$0xff]  ;;  %v235_v43 = vld [vmem:[#allocation2 + $0x48] sm:$0xff] }
  0x26   :  { %276 = vmatpush1.msra.mxu0 %v252_v17  ;;  %v234_v44 = vld [vmem:[#allocation2 + $0x40] sm:$0xff]  ;;  %v233_v45 = vld [vmem:[#allocation2 + $0x38] sm:$0xff]  ;;  %v232_v46 = vld [vmem:[#allocation2 + $0x30] sm:$0xff] }
  0x27   :  { %277 = vmatprep.subr.mxu0 %v251_v20  ;;  %v56_v26 = vrot.slane %v55_v22, 1  ;;  %v63_v27 = vrot.slane %v62_v23, 1  ;;  %v231_v47 = vld [vmem:[#allocation2 + $0x28] sm:$0xff]  ;;  %v230_v48 = vld [vmem:[#allocation2 + $0x20] sm:$0xff]  ;;  %v229_v49 = vld [vmem:[#allocation2 + $0x18] sm:$0xff] }
  0x28   :  { %278 = vmatpush1.msra.mxu0 %v250_v21  ;;  %v228_v50 = vld [vmem:[#allocation2 + $0x10] sm:$0xff]  ;;  %v227_v51 = vld [vmem:[#allocation2 + $0x8] sm:$0xff]  ;;  %v226_v52 = vld [vmem:[#allocation2] sm:$0xff] }
  0x29   :  { %279 = vmatprep.subr.mxu0 %v249_v24  ;;  %v57_v30 = vadd.f32 %v56_v26, %v55_v22  ;;  %v64_v31 = vadd.f32 %v63_v27, %v62_v23  ;;  %v379_v53 = vld [vmem:[#allocation4 + $0xf8] sm:$0xff]  ;;  %v378_v55 = vld [vmem:[#allocation4 + $0xf0] sm:$0xff]  ;;  %v377_v57 = vld [vmem:[#allocation4 + $0xe8] sm:$0xff] }
  0x2a   :  { %280 = vmatpush1.msra.mxu0 %v248_v25  ;;  %v363_v54 = vld [vmem:[#allocation4 + $0x78] sm:$0xff]  ;;  %470 = vmatprep.subr.mxu1 %v379_v53  ;;  %v362_v56 = vld [vmem:[#allocation4 + $0x70] sm:$0xff]  ;;  %v361_v58 = vld [vmem:[#allocation4 + $0x68] sm:$0xff] }
  0x2b   :  { %281 = vmatprep.subr.mxu0 %v247_v28  ;;  %v145_v34 = vsel %vm144_vm2, %v64_v31, %v57_v30  ;;  %v376_v59 = vld [vmem:[#allocation4 + $0xe0] sm:$0xff]  ;;  %v375_v61 = vld [vmem:[#allocation4 + $0xd8] sm:$0xff]  ;;  %v374_v63 = vld [vmem:[#allocation4 + $0xd0] sm:$0xff]  ;;  %v261_v30 = vlaneseq }
  0x2c   :  { %282 = vmatpush1.msra.mxu0 %v246_v29  ;;  %513 = vmatmul.mubr.msk.f32.vlgmr.msra.gmra.mxu1 %vm50_vm1, %v145_v34  ;;  %v360_v60 = vld [vmem:[#allocation4 + $0x60] sm:$0xff]  ;;  %v359_v62 = vld [vmem:[#allocation4 + $0x58] sm:$0xff]  ;;  %v358_v0 = vld [vmem:[#allocation4 + $0x50] sm:$0xff] }
  0x2d   :  { %283 = vmatprep.subr.mxu0 %v245_v32  ;;  %471 = vmatpush3.msra.mxu1 %v363_v54  ;;  %v373_v1 = vld [vmem:[#allocation4 + $0xc8] sm:$0xff]  ;;  %v372_v3 = vld [vmem:[#allocation4 + $0xc0] sm:$0xff]  ;;  %v371_v5 = vld [vmem:[#allocation4 + $0xb8] sm:$0xff]  ;;  %v262_v31 = vshrl.u32 %v261_v30, 7 }
  0x2e   :  { %284 = vmatpush1.msra.mxu0 %v244_v33  ;;  %472 = vmatprep.subr.mxu1 %v378_v55  ;;  %v357_v2 = vld [vmem:[#allocation4 + $0x48] sm:$0xff]  ;;  %v356_v4 = vld [vmem:[#allocation4 + $0x40] sm:$0xff]  ;;  %v355_v6 = vld [vmem:[#allocation4 + $0x38] sm:$0xff] }
  0x2f   :  { %285 = vmatprep.subr.mxu0 %v243_v35  ;;  %473 = vmatpush3.msra.mxu1 %v362_v56  ;;  %v370_v7 = vld [vmem:[#allocation4 + $0xb0] sm:$0xff]  ;;  %v369_v9 = vld [vmem:[#allocation4 + $0xa8] sm:$0xff]  ;;  %v368_v11 = vld [vmem:[#allocation4 + $0xa0] sm:$0xff]  ;;  %v263_v32 = vsub.s32 0, %v262_v31  ;;  %v267_v34 = vsub.s32 1, %v262_v31 }
  0x30   :  { %286 = vmatpush1.msra.mxu0 %v242_v36  ;;  %474 = vmatprep.subr.mxu1 %v377_v57  ;;  %v354_v8 = vld [vmem:[#allocation4 + $0x30] sm:$0xff]  ;;  %v353_v10 = vld [vmem:[#allocation4 + $0x28] sm:$0xff]  ;;  %v464_v14 = vld [vmem:[%s638_s2 + $0x10] ss:$0 sm:$0xff] }
  0x31   :  { %287 = vmatprep.subr.mxu0 %v241_v37  ;;  %475 = vmatpush3.msra.mxu1 %v361_v58  ;;  %v352_v21 = vld [vmem:[#allocation4 + $0x20] sm:$0xff]  ;;  %v367_v22 = vld [vmem:[#allocation4 + $0x98] sm:$0xff]  ;;  %v366_v24 = vld [vmem:[#allocation4 + $0x90] sm:$0xff] }
  0x32   :  { %288 = vmatpush1.msra.mxu0 %v240_v38  ;;  %476 = vmatprep.subr.mxu1 %v376_v59  ;;  %v351_v23 = vld [vmem:[#allocation4 + $0x18] sm:$0xff]  ;;  %v350_v25 = vld [vmem:[#allocation4 + $0x10] sm:$0xff]  ;;  %v365_v26 = vld [vmem:[#allocation4 + $0x88] sm:$0xff] }
  0x33   :  { %289 = vmatprep.subr.mxu0 %v239_v39  ;;  %477 = vmatpush3.msra.mxu1 %v360_v60  ;;  %v349_v27 = vld [vmem:[#allocation4 + $0x8] sm:$0xff]  ;;  %v364_v28 = vld [vmem:[#allocation4 + $0x80] sm:$0xff]  ;;  %v259_v33 = vld [vmem:[#allocation2 + $0x100] ss:$8 sm:$0x3] }
  0x34   :  { %290 = vmatpush1.msra.mxu0 %v238_v40  ;;  %478 = vmatprep.subr.mxu1 %v375_v61  ;;  %v348_v29 = vld [vmem:[#allocation4] sm:$0xff]  ;;  %v264_v35 = vrot.slane %v259_v33, %v263_v32  ;;  %v268_v36 = vrot.slane %v259_v33, %v267_v34 }
  0x35   :  { %291 = vmatprep.subr.mxu0 %v237_v41  ;;  %479 = vmatpush3.msra.mxu1 %v359_v62 }
  0x36   :  { %292 = vmatpush1.msra.mxu0 %v236_v42  ;;  %480 = vmatprep.subr.mxu1 %v374_v63 }
  0x37   :  { %293 = vmatprep.subr.mxu0 %v235_v43  ;;  %481 = vmatpush3.msra.mxu1 %v358_v0 }
  0x38   :  { %294 = vmatpush1.msra.mxu0 %v234_v44  ;;  %482 = vmatprep.subr.mxu1 %v373_v1 }
  0x39   :  { %295 = vmatprep.subr.mxu0 %v233_v45  ;;  %483 = vmatpush3.msra.mxu1 %v357_v2 }
  0x3a   :  { %296 = vmatpush1.msra.mxu0 %v232_v46  ;;  %484 = vmatprep.subr.mxu1 %v372_v3  ;;  %v465_v46 = vld [vmem:[#allocation4 + $0x100] ss:$0 sm:$0xff] }
  0x3b   :  { %297 = vmatprep.subr.mxu0 %v231_v47  ;;  %485 = vmatpush3.msra.mxu1 %v356_v4 }
  0x3c   :  { %298 = vmatpush1.msra.mxu0 %v230_v48  ;;  %486 = vmatprep.subr.mxu1 %v371_v5 }
  0x3d   :  { %299 = vmatprep.subr.mxu0 %v229_v49  ;;  %487 = vmatpush3.msra.mxu1 %v355_v6 }
  0x3e   :  { %300 = vmatpush1.msra.mxu0 %v228_v50  ;;  %488 = vmatprep.subr.mxu1 %v370_v7 }
  0x3f   :  { %301 = vmatprep.subr.mxu0 %v227_v51  ;;  %489 = vmatpush3.msra.mxu1 %v354_v8 }
  0x40   :  { %302 = vmatpush1.msra.mxu0 %v226_v52  ;;  %490 = vmatprep.subr.mxu1 %v369_v9 }
  0x41   :  { %491 = vmatpush3.msra.mxu1 %v353_v10 }
  0x42   :  { %492 = vmatprep.subr.mxu1 %v368_v11 }
  0x43   :  { %493 = vmatpush3.msra.mxu1 %v352_v21 }
  0x44   :  { %494 = vmatprep.subr.mxu1 %v367_v22 }
  0x45   :  { %495 = vmatpush3.msra.mxu1 %v351_v23 }
  0x46   :  { %496 = vmatprep.subr.mxu1 %v366_v24 }
  0x47   :  { %497 = vmatpush3.msra.mxu1 %v350_v25 }
  0x48   :  { %498 = vmatprep.subr.mxu1 %v365_v26 }
  0x49   :  { %499 = vmatpush3.msra.mxu1 %v349_v27 }
  0x4a   :  { %500 = vmatprep.subr.mxu1 %v364_v28 }
  0x4b   :  { %501 = vmatpush3.msra.mxu1 %v348_v29 }
  0xe0   :  { %v138_v12 = vpop.f32.mrf.mxu0 }
  0xe2   :  { %v509_v13 = vpop.f32.mrf.mxu0 }
  0xec   :  { %v214_v15 = vpop.f32.mrf.mxu1 }
  0xed   :  { %v215_v16 = vadd.f32 %v214_v15, %v138_v12 }
  0xee   :  { %v514_v17 = vpop.f32.mrf.mxu1 }
  0xef   :  { %v222_v18 = vadd.f32 %v464_v14, %v215_v16 }
  0xf1   :  { %v224_v19 = vmul.f32 0.01, %v222_v18  ;;  %vm223_vm3 = vcmp.ge.f32.partialorder %v222_v18, 0.0 }
  0xf3   :  { %v225_v20 = vsel %vm223_vm3, %v222_v18, %v224_v19 }
  0xf4   :  { %336 = vmatmul.mubr.f32.vlgmr.msra.gmra.mxu0 %v225_v20 }
 0x1b4   :  { %v337_v37 = vpop.f32.mrf.mxu0 }
 0x1b5   :  { %v338_v38 = vadd.f32 %v337_v37, %v264_v35 }
 0x1b6   :  { %v339_v39 = vpop.f32.mrf.mxu0 }
 0x1b7   :  { %v340_v40 = vadd.f32 %v339_v39, %v268_v36  ;;  %v344_v41 = vmul.f32 0.01, %v338_v38  ;;  %vm342_vm4 = vcmp.ge.f32.partialorder %v338_v38, 0.0 }
 0x1b9   :  { %v345_v42 = vmul.f32 0.01, %v340_v40  ;;  %vm343_vm5 = vcmp.ge.f32.partialorder %v340_v40, 0.0  ;;  %v346_v44 = vsel %vm342_vm4, %v338_v38, %v344_v41 }
 0x1bb   :  { %v347_v43 = vsel %vm343_vm5, %v340_v40, %v345_v42 }
 0x1bc   :  { %449 = vmatprep.mubr.f32.mxu1 %v347_v43 }
 0x1bd   :  { %450 = vmatmul.mubr.f32.vlgmr.msra.gmra.mxu1 %v346_v44 }
 0x27d   :  { %v502_v45 = vpop.f32.mrf.mxu1 }
 0x27f   :  { %v503_v47 = vpop.f32.mrf.mxu1 }
 0x280   :  { %v504_v48 = vadd.f32 %v503_v47, %v502_v45 }
 0x282   :  { %v452_v49 = vadd.f32 %v504_v48, %v465_v46 }
 0x284   :  { %455 = vst [vmem:[%s641_s5] sm:$0x3] %v452_v49 }
 0x285   :  { %460 = vsyncpa [#allocation3], 1 }
 0x286   :  { %461 = vsyncpa [#allocation5], 1 }

</bundles_post_ra>
